<compile_context>
chip_gen: v7x
topology: tpu7x:2x2x1
jax: 0.10.0
libtpu: 0.0.40
codegen_flags: <defaults>
</compile_context>

<pallas_src>
import functools

import jax
import jax.numpy as jnp
from jax import lax
from jax.experimental import pallas as pl
from jax.experimental.pallas import tpu as pltpu

LANE = 128


def _round_up(n, m):
    return ((n + m - 1) // m) * m


def _pad2d(a, rows, cols):
    r, c = a.shape
    return jnp.pad(a, ((0, rows - r), (0, cols - c)))


# --------------------------------------------------------------------------
# Fused Pallas kernel (one grid step = one batch element's tokens):
#   patch-embed matmul -> LayerNorm -> token-mean pool -> head matmul
# All operands are zero-padded to lane-dense (…, 128) slabs.
# --------------------------------------------------------------------------
def _fused_vit_kernel(xp_ref, w1_ref, b1_ref, g_ref, beta_ref, w2_ref, b2_ref,
                      o_ref, *, tokens, hidden, eps):
    # ---- patch_embed: [T, Kp] @ [Kp, Dp] + [1, Dp]  (MXU, f32 accum) -------
    h = jnp.dot(xp_ref[...], w1_ref[...],
                preferred_element_type=jnp.float32) + b1_ref[...]
    # INVARIANT (do not break): padded columns of w1/b1 are exactly zero, so
    # padded columns of h are exactly zero; the LayerNorm mean below relies on
    # summing over ALL lanes while dividing by the true `hidden`.

    # ---- norm: LayerNorm over the `hidden` valid columns -------------------
    dp = h.shape[-1]
    d_idx = lax.broadcasted_iota(jnp.int32, (1, dp), 1)
    valid = (d_idx < hidden).astype(jnp.float32)
    mean = jnp.sum(h, axis=-1, keepdims=True) * (1.0 / hidden)
    centered = (h - mean) * valid                       # zero in padded lanes
    var = jnp.sum(centered * centered, axis=-1, keepdims=True) * (1.0 / hidden)
    ln = centered * lax.rsqrt(var + eps) * g_ref[...] + beta_ref[...]
    # gamma/beta are zero-padded, so padded columns of ln are exactly zero.

    # ---- pool: per-batch token mean (sublane reduction, no pool matrix) ----
    pooled = jnp.sum(ln, axis=0, keepdims=True) * (1.0 / tokens)    # [1, Dp]
    pooled8 = jnp.broadcast_to(pooled, (8, dp))         # 8 sublanes -> M=8

    # ---- head: [8, Dp] @ [Dp, Cp] + [1, Cp]; unmasked 8-sublane store ------
    head = jnp.dot(pooled8, w2_ref[...],
                   preferred_element_type=jnp.float32) + b2_ref[...]
    o_ref[0] = head


def fused_vit_forward(xp, w1, b1, g, beta, w2, b2, *, batch, tokens, hidden,
                      eps=1e-5):
    kp = xp.shape[1]
    dp = w1.shape[1]
    cp = w2.shape[1]
    kernel = functools.partial(_fused_vit_kernel, tokens=tokens, hidden=hidden,
                               eps=eps)
    return pl.pallas_call(
        kernel,
        out_shape=jax.ShapeDtypeStruct((batch, 8, cp), jnp.float32),
        grid=(batch,),
        in_specs=[
            pl.BlockSpec((tokens, kp), lambda b: (b, 0)),   # xp: per-batch rows
            pl.BlockSpec((kp, dp), lambda b: (0, 0)),       # w1 (cached pad)
            pl.BlockSpec((1, dp), lambda b: (0, 0)),        # b1
            pl.BlockSpec((1, dp), lambda b: (0, 0)),        # gamma
            pl.BlockSpec((1, dp), lambda b: (0, 0)),        # beta
            pl.BlockSpec((dp, cp), lambda b: (0, 0)),       # w2
            pl.BlockSpec((1, cp), lambda b: (0, 0)),        # b2
        ],
        out_specs=pl.BlockSpec((1, 8, cp), lambda b: (b, 0, 0)),
        compiler_params=pltpu.CompilerParams(
            dimension_semantics=("parallel",)),
    )(xp, w1, b1, g, beta, w2, b2)


# --------------------------------------------------------------------------
# Parameters of the wrapped model (named children: patch_embed / norm / head)
# --------------------------------------------------------------------------
def make_params(key, in_chans, hidden, patch, num_classes):
    k1, k2, k3, _k4, k5, _k6 = jax.random.split(key, 6)
    patch_dim = in_chans * patch * patch
    return {
        "patch_embed_w": 0.02 * jax.random.normal(k1, (patch_dim, hidden), jnp.float32),
        "patch_embed_b": 0.02 * jax.random.normal(k2, (hidden,), jnp.float32),
        "norm_g": jnp.ones((hidden,), jnp.float32),
        "norm_b": jnp.zeros((hidden,), jnp.float32),
        "head_w": 0.02 * jax.random.normal(k5, (hidden, num_classes), jnp.float32),
        "head_b": jnp.zeros((num_classes,), jnp.float32),
    }


def prepare_padded_params(params):
    """Pad constant weights to lane-dense slabs ONCE (outside the per-call
    path).  Padded columns/rows are zeros — the kernel's masked LayerNorm and
    zero-padded head rows depend on this."""
    patch_dim, hidden = params["patch_embed_w"].shape
    num_classes = params["head_w"].shape[1]
    kp = _round_up(patch_dim, LANE)
    dp = _round_up(hidden, LANE)
    cp = _round_up(num_classes, LANE)
    return {
        "w1": _pad2d(params["patch_embed_w"], kp, dp),
        "b1": _pad2d(params["patch_embed_b"].reshape(1, -1), 1, dp),
        "g": _pad2d(params["norm_g"].reshape(1, -1), 1, dp),
        "beta": _pad2d(params["norm_b"].reshape(1, -1), 1, dp),
        "w2": _pad2d(params["head_w"], dp, cp),
        "b2": _pad2d(params["head_b"].reshape(1, -1), 1, cp),
    }


# --------------------------------------------------------------------------
# VerboseExecution: run the (fused) model; print "<name>: in->out" per child.
# TODO(synk): PyTorch's dynamic forward-hook registration on arbitrary
# nn.Module children has no in-kernel equivalent; hook prints are emitted at
# trace time with the statically-known per-child shapes of the unfused model
# (i.e. once per compilation, not once per call).
# --------------------------------------------------------------------------
@functools.partial(jax.jit, static_argnames=("patch", "hidden", "num_classes"))
def verbose_execution(padded, x, *, patch, hidden, num_classes):
    B, C, H, W = x.shape
    hp, wp = H // patch, W // patch
    T = hp * wp
    patch_dim = C * patch * patch

    # Forward-hook semantics (shapes of the conceptual named children of the
    # wrapped PyTorch model, including the NCHW conv output we never build).
    print(f"patch_embed: {(B, C, H, W)}->{(B, hidden, hp, wp)}")
    print(f"flatten: {(B, hidden, hp, wp)}->{(B, T, hidden)}")
    print(f"norm: {(B, T, hidden)}->{(B, T, hidden)}")
    print(f"pool: {(B, T, hidden)}->{(B, hidden)}")
    print(f"head: {(B, hidden)}->{(B, num_classes)}")

    # Patchify (plain-JAX glue, fused by XLA under jit).  The conv-output NCHW
    # transpose and its inverse in `flatten` cancel and are skipped.
    # TODO(synk): fold patch extraction into the kernel at large image sizes.
    xp = x.reshape(B, C, hp, patch, wp, patch)
    xp = jnp.transpose(xp, (0, 2, 4, 1, 3, 5)).reshape(B * T, patch_dim)

    # Only the activation needs per-call padding (weights are pre-padded).
    kp = padded["w1"].shape[0]
    xp_p = jnp.pad(xp, ((0, 0), (0, kp - patch_dim)))

    assert T % 8 == 0, "per-batch token block must be sublane-aligned"

    logits_p = fused_vit_forward(
        xp_p, padded["w1"], padded["b1"], padded["g"], padded["beta"],
        padded["w2"], padded["b2"], batch=B, tokens=T, hidden=hidden)
    # (B, 8, Cp): all 8 sublanes carry the same logits; take row 0, valid cols.
    return logits_p[:, 0, :num_classes]


# --------------------------------------------------------------------------
# Pure-JAX reference (unfused) for correctness checking.
# --------------------------------------------------------------------------
def reference_forward(params, x, patch, hidden):
    B, C, H, W = x.shape
    hp, wp = H // patch, W // patch
    xp = x.reshape(B, C, hp, patch, wp, patch)
    xp = jnp.transpose(xp, (0, 2, 4, 1, 3, 5)).reshape(B * hp * wp, C * patch * patch)
    h = xp @ params["patch_embed_w"] + params["patch_embed_b"]
    h = h.reshape(B, hp * wp, hidden)
    mean = h.mean(-1, keepdims=True)
    var = ((h - mean) ** 2).mean(-1, keepdims=True)
    ln = (h - mean) / jnp.sqrt(var + 1e-5) * params["norm_g"] + params["norm_b"]
    pooled = ln.mean(axis=1)
    return pooled @ params["head_w"] + params["head_b"]


if __name__ == "__main__":
    B, C, H, W = 2, 4, 16, 16
    PATCH, HIDDEN, NUM_CLASSES = 4, 32, 10

    key = jax.random.PRNGKey(0)
    kx, kparam = jax.random.split(key)
    x = jax.random.normal(kx, (B, C, H, W), jnp.float32)
    params = make_params(kparam, C, HIDDEN, PATCH, NUM_CLASSES)
    padded = prepare_padded_params(params)   # one-time, cached across calls

    out = verbose_execution(padded, x, patch=PATCH, hidden=HIDDEN,
                            num_classes=NUM_CLASSES)
    out = jax.block_until_ready(out)

    ref = reference_forward(params, x, PATCH, HIDDEN)
    assert out.shape == (B, NUM_CLASSES)
    assert bool(jnp.all(jnp.isfinite(out)))
    assert bool(jnp.allclose(out, ref, rtol=1e-4, atol=1e-4)), "mismatch vs reference"
    print("KERNEL_OK")
</pallas_src>

<mosaic_0001>
module attributes {stable_mosaic.version = 11 : i64} {
  func.func @_fused_vit_kernel(%arg0: i32, %arg1: memref<16x128xf32, #tpu.memory_space<vmem>>, %arg2: memref<128x128xf32, #tpu.memory_space<vmem>>, %arg3: memref<1x128xf32, #tpu.memory_space<vmem>>, %arg4: memref<1x128xf32, #tpu.memory_space<vmem>>, %arg5: memref<1x128xf32, #tpu.memory_space<vmem>>, %arg6: memref<128x128xf32, #tpu.memory_space<vmem>>, %arg7: memref<1x128xf32, #tpu.memory_space<vmem>>, %arg8: memref<1x8x128xf32, #tpu.memory_space<vmem>>) attributes {dimension_semantics = [#tpu.dimension_semantics<parallel>], iteration_bounds = array<i64: 2>, scalar_prefetch = 0 : i64, scratch_operands = 0 : i64, tpu.core_type = #tpu.core_type<tc>, window_params = [{transform_indices = @transform_0, window_bounds = array<i64: 16, 128>}, {pipeline_mode = #tpu.pipeline_mode<synchronous>, transform_indices = @transform_1, window_bounds = array<i64: 128, 128>}, {pipeline_mode = #tpu.pipeline_mode<synchronous>, transform_indices = @transform_2, window_bounds = array<i64: 1, 128>}, {pipeline_mode = #tpu.pipeline_mode<synchronous>, transform_indices = @transform_3, window_bounds = array<i64: 1, 128>}, {pipeline_mode = #tpu.pipeline_mode<synchronous>, transform_indices = @transform_4, window_bounds = array<i64: 1, 128>}, {pipeline_mode = #tpu.pipeline_mode<synchronous>, transform_indices = @transform_5, window_bounds = array<i64: 128, 128>}, {pipeline_mode = #tpu.pipeline_mode<synchronous>, transform_indices = @transform_6, window_bounds = array<i64: 1, 128>}, {transform_indices = @transform_7, window_bounds = array<i64: 1, 8, 128>}]} {
    %c0 = arith.constant 0 : index
    %c0_0 = arith.constant 0 : index
    %0 = vector.load %arg1[%c0, %c0_0] : memref<16x128xf32, #tpu.memory_space<vmem>>, vector<16x128xf32>
    %c0_1 = arith.constant 0 : index
    %c0_2 = arith.constant 0 : index
    %1 = vector.load %arg2[%c0_1, %c0_2] : memref<128x128xf32, #tpu.memory_space<vmem>>, vector<128x128xf32>
    %cst = arith.constant dense<0.000000e+00> : vector<16x128xf32>
    %2 = tpu.matmul %0, %1, %cst {dimension_numbers = #tpu.dot_dimension_numbers<[1], [0], [0], [1], [0, 0, 1, 1], [], []>} : vector<16x128xf32>, vector<128x128xf32>, vector<16x128xf32> -> vector<16x128xf32>
    %c0_3 = arith.constant 0 : index
    %c0_4 = arith.constant 0 : index
    %3 = vector.load %arg3[%c0_3, %c0_4] : memref<1x128xf32, #tpu.memory_space<vmem>>, vector<1x128xf32>
    %4 = vector.broadcast %3 : vector<1x128xf32> to vector<16x128xf32>
    %5 = arith.addf %2, %4 : vector<16x128xf32>
    %6 = tpu.iota {dimensions = array<i32: 1>} : vector<1x128xi32>
    %c32_i32 = arith.constant 32 : i32
    %7 = vector.broadcast %c32_i32 : i32 to vector<1x128xi32>
    %8 = arith.cmpi slt, %6, %7 : vector<1x128xi32>
    %9 = arith.extui %8 : vector<1x128xi1> to vector<1x128xi32>
    %10 = arith.sitofp %9 : vector<1x128xi32> to vector<1x128xf32>
    %cst_5 = arith.constant dense<0.000000e+00> : vector<16xf32>
    %11 = vector.multi_reduction <add>, %5, %cst_5 [1] : vector<16x128xf32> to vector<16xf32>
    %12 = vector.shape_cast %11 : vector<16xf32> to vector<16x1xf32>
    %cst_6 = arith.constant 3.125000e-02 : f32
    %13 = vector.broadcast %cst_6 : f32 to vector<16x1xf32>
    %14 = arith.mulf %12, %13 : vector<16x1xf32>
    %15 = vector.broadcast %14 : vector<16x1xf32> to vector<16x128xf32>
    %16 = arith.subf %5, %15 : vector<16x128xf32>
    %17 = vector.broadcast %10 : vector<1x128xf32> to vector<16x128xf32>
    %18 = arith.mulf %16, %17 : vector<16x128xf32>
    %19 = arith.mulf %18, %18 : vector<16x128xf32>
    %cst_7 = arith.constant dense<0.000000e+00> : vector<16xf32>
    %20 = vector.multi_reduction <add>, %19, %cst_7 [1] : vector<16x128xf32> to vector<16xf32>
    %21 = vector.shape_cast %20 : vector<16xf32> to vector<16x1xf32>
    %cst_8 = arith.constant 3.125000e-02 : f32
    %22 = vector.broadcast %cst_8 : f32 to vector<16x1xf32>
    %23 = arith.mulf %21, %22 : vector<16x1xf32>
    %cst_9 = arith.constant 9.99999974E-6 : f32
    %24 = vector.broadcast %cst_9 : f32 to vector<16x1xf32>
    %25 = arith.addf %23, %24 : vector<16x1xf32>
    %26 = math.rsqrt %25 : vector<16x1xf32>
    %27 = vector.broadcast %26 : vector<16x1xf32> to vector<16x128xf32>
    %28 = arith.mulf %18, %27 : vector<16x128xf32>
    %c0_10 = arith.constant 0 : index
    %c0_11 = arith.constant 0 : index
    %29 = vector.load %arg4[%c0_10, %c0_11] : memref<1x128xf32, #tpu.memory_space<vmem>>, vector<1x128xf32>
    %30 = vector.broadcast %29 : vector<1x128xf32> to vector<16x128xf32>
    %31 = arith.mulf %28, %30 : vector<16x128xf32>
    %c0_12 = arith.constant 0 : index
    %c0_13 = arith.constant 0 : index
    %32 = vector.load %arg5[%c0_12, %c0_13] : memref<1x128xf32, #tpu.memory_space<vmem>>, vector<1x128xf32>
    %33 = vector.broadcast %32 : vector<1x128xf32> to vector<16x128xf32>
    %34 = arith.addf %31, %33 : vector<16x128xf32>
    %cst_14 = arith.constant dense<0.000000e+00> : vector<128xf32>
    %35 = vector.multi_reduction <add>, %34, %cst_14 [0] : vector<16x128xf32> to vector<128xf32>
    %36 = vector.shape_cast %35 : vector<128xf32> to vector<1x128xf32>
    %cst_15 = arith.constant 6.250000e-02 : f32
    %37 = vector.broadcast %cst_15 : f32 to vector<1x128xf32>
    %38 = arith.mulf %36, %37 : vector<1x128xf32>
    %39 = vector.shape_cast %38 : vector<1x128xf32> to vector<1x128xf32>
    %40 = vector.broadcast %39 : vector<1x128xf32> to vector<8x128xf32>
    %c0_16 = arith.constant 0 : index
    %c0_17 = arith.constant 0 : index
    %41 = vector.load %arg6[%c0_16, %c0_17] : memref<128x128xf32, #tpu.memory_space<vmem>>, vector<128x128xf32>
    %cst_18 = arith.constant dense<0.000000e+00> : vector<8x128xf32>
    %42 = tpu.matmul %40, %41, %cst_18 {dimension_numbers = #tpu.dot_dimension_numbers<[1], [0], [0], [1], [0, 0, 1, 1], [], []>} : vector<8x128xf32>, vector<128x128xf32>, vector<8x128xf32> -> vector<8x128xf32>
    %c0_19 = arith.constant 0 : index
    %c0_20 = arith.constant 0 : index
    %43 = vector.load %arg7[%c0_19, %c0_20] : memref<1x128xf32, #tpu.memory_space<vmem>>, vector<1x128xf32>
    %44 = vector.broadcast %43 : vector<1x128xf32> to vector<8x128xf32>
    %45 = arith.addf %42, %44 : vector<8x128xf32>
    %c0_21 = arith.constant 0 : index
    %c0_22 = arith.constant 0 : index
    %c0_23 = arith.constant 0 : index
    %46 = vector.load %arg8[%c0_21, %c0_22, %c0_23] : memref<1x8x128xf32, #tpu.memory_space<vmem>>, vector<1x8x128xf32>
    %47 = vector.shape_cast %46 : vector<1x8x128xf32> to vector<8x128xf32>
    %48 = vector.shape_cast %45 : vector<8x128xf32> to vector<1x8x128xf32>
    tpu.vector_store %arg8[%c0_21, %c0_22, %c0_23], %48 {strides = array<i32>} : memref<1x8x128xf32, #tpu.memory_space<vmem>>, vector<1x8x128xf32>,
    return
  }
  func.func @transform_0(%arg0: i32) -> (i32, i32) {
    %c0_i32 = arith.constant 0 : i32
    %c0_i32_0 = arith.constant 0 : i32
    return %arg0, %c0_i32 : i32, i32
  }
  func.func @transform_1(%arg0: i32) -> (i32, i32) {
    %c0_i32 = arith.constant 0 : i32
    %c0_i32_0 = arith.constant 0 : i32
    %c0_i32_1 = arith.constant 0 : i32
    return %c0_i32, %c0_i32_0 : i32, i32
  }
  func.func @transform_2(%arg0: i32) -> (i32, i32) {
    %c0_i32 = arith.constant 0 : i32
    %c0_i32_0 = arith.constant 0 : i32
    %c0_i32_1 = arith.constant 0 : i32
    return %c0_i32, %c0_i32_0 : i32, i32
  }
  func.func @transform_3(%arg0: i32) -> (i32, i32) {
    %c0_i32 = arith.constant 0 : i32
    %c0_i32_0 = arith.constant 0 : i32
    %c0_i32_1 = arith.constant 0 : i32
    return %c0_i32, %c0_i32_0 : i32, i32
  }
  func.func @transform_4(%arg0: i32) -> (i32, i32) {
    %c0_i32 = arith.constant 0 : i32
    %c0_i32_0 = arith.constant 0 : i32
    %c0_i32_1 = arith.constant 0 : i32
    return %c0_i32, %c0_i32_0 : i32, i32
  }
  func.func @transform_5(%arg0: i32) -> (i32, i32) {
    %c0_i32 = arith.constant 0 : i32
    %c0_i32_0 = arith.constant 0 : i32
    %c0_i32_1 = arith.constant 0 : i32
    return %c0_i32, %c0_i32_0 : i32, i32
  }
  func.func @transform_6(%arg0: i32) -> (i32, i32) {
    %c0_i32 = arith.constant 0 : i32
    %c0_i32_0 = arith.constant 0 : i32
    %c0_i32_1 = arith.constant 0 : i32
    return %c0_i32, %c0_i32_0 : i32, i32
  }
  func.func @transform_7(%arg0: i32) -> (i32, i32, i32) {
    %c0_i32 = arith.constant 0 : i32
    %c0_i32_0 = arith.constant 0 : i32
    %c0_i32_1 = arith.constant 0 : i32
    return %arg0, %c0_i32, %c0_i32_0 : i32, i32, i32
  }
}

</mosaic_0001>

<bundles_post_ra>
// kernel: verbose_execution.1
= control target key start
LH: loop header
LB: loop body
LE: loop exit
PB: predicated region body
PF: predicated region fallthrough
CT: control target
= control target key end

     0   :  { %s823_s24 = smov 0   ;;  %s953_s0 = inlined_call_operand.vmem [shape: f32[32,128], index: 0, kind: input, shape index: {}]   ;;  %s954_s1 = inlined_call_operand.vmem [shape: f32[128,128], index: 1, kind: input, shape index: {}]   ;;  %s955_s2 = inlined_call_operand.vmem [shape: f32[1,128], index: 2, kind: input, shape index: {}]   ;;  %s956_s3 = inlined_call_operand.vmem [shape: f32[1,128], index: 3, kind: input, shape index: {}]   ;;  %s957_s4 = inlined_call_operand.vmem [shape: f32[1,128], index: 4, kind: input, shape index: {}]   ;;  %s958_s5 = inlined_call_operand.vmem [shape: f32[128,128], index: 5, kind: input, shape index: {}]   ;;  %s959_s6 = inlined_call_operand.vmem [shape: f32[1,128], index: 6, kind: input, shape index: {}]   ;;  %s960_s7 = inlined_call_operand.vmem [shape: f32[2,8,128], index: 7, kind: output, shape index: {}]  }
   0x1 LB: > { %s829_s25 = sadd.s32 4294967295, %s778_s24   ;;  %p585_p0 = scmp.ge.s32.totalorder %s778_s24, 1  ;;  %s778_s24 = sphi %s823_s24, %s17_s24  }
   0x2   : > { %p238_p1 = scmp.lt.s32.totalorder %s778_s24, 3 }
   0x4   : > { %p239_p2 = pnand %p585_p0, %p238_p1 }
   0x5   : > { %v281_v0 = vld [vmem:[%s954_s1] sm:$0xff] (!%p239_p2)  ;;  %v282_v1 = vld [vmem:[%s954_s1 + $0x8] sm:$0xff] (!%p239_p2)  ;;  %v283_v2 = vld [vmem:[%s954_s1 + $0x10] sm:$0xff] (!%p239_p2)  ;;  %s586_s9 = sshll.u32 (!%p239_p2), %s829_s25, 1  ;;  %v379_v31 = vlaneseq (!%p239_p2)  ;;  %v780_v35 = vmov (!%p239_p2), 0.0   ;;  %v781_v48 = vmov (!%p239_p2), 0.0|0.0  }
   0x6   : > { %242 = sbr.rel (%p239_p2) target bundleno = 803 (0x323), region = 48  ;;  %v701_v3 = vpack.c.bf16 (!%p239_p2), %v282_v1, %v281_v0  ;;  %v284_v4 = vld [vmem:[%s954_s1 + $0x18] sm:$0xff] (!%p239_p2)  ;;  %p270_p3 = scmp.lt.s32.totalorder (!%p239_p2), %s586_s9, 3  ;;  %v285_v6 = vld [vmem:[%s954_s1 + $0x20] sm:$0xff] (!%p239_p2)  ;;  %v286_v7 = vld [vmem:[%s954_s1 + $0x28] sm:$0xff] (!%p239_p2)  ;;  %733 = vmatprep.subr.bf16.mxu1 (!%p239_p2), %v781_v48  ;;  %vm782_vm1 = vmmov (!%p239_p2), 0  }
   0x7   : > { %v705_v5 = vpack.c.bf16 (!%p239_p2), %v284_v4, %v283_v2  ;;  %v709_v8 = vpack.c.bf16 (!%p239_p2), %v286_v7, %v285_v6  ;;  %v287_v9 = vld [vmem:[%s954_s1 + $0x30] sm:$0xff] (!%p239_p2)  ;;  %v288_v10 = vld [vmem:[%s954_s1 + $0x38] sm:$0xff] (!%p239_p2)  ;;  %v289_v13 = vld [vmem:[%s954_s1 + $0x40] sm:$0xff] (!%p239_p2)  ;;  %v380_v32 = vand.u32 (!%p239_p2), 127, %v379_v31  ;;  %698 = vmatprep.mubr.msk.f32.mxu1 (!%p239_p2), %vm782_vm1, %v780_v35  ;;  %p275_p4 = scmp.lt.s32.totalorder (!%p239_p2), %s829_s25, 1 }
   0x8   : > { %702 = vmatprep.subr.bf16.mxu0 (!%p239_p2), %v701_v3  ;;  %v713_v12 = vpack.c.bf16 (!%p239_p2), %v288_v10, %v287_v9  ;;  %v290_v14 = vld [vmem:[%s954_s1 + $0x48] sm:$0xff] (!%p239_p2)  ;;  %v291_v16 = vld [vmem:[%s954_s1 + $0x50] sm:$0xff] (!%p239_p2)  ;;  %v292_v17 = vld [vmem:[%s954_s1 + $0x58] sm:$0xff] (!%p239_p2) }
   0x9   : > { %704 = vmatpush3.bf16.msra.mxu0 (!%p239_p2), %v701_v3  ;;  %v717_v15 = vpack.c.bf16 (!%p239_p2), %v290_v14, %v289_v13  ;;  %v721_v18 = vpack.c.bf16 (!%p239_p2), %v292_v17, %v291_v16  ;;  %v293_v19 = vld [vmem:[%s954_s1 + $0x60] sm:$0xff] (!%p239_p2)  ;;  %v294_v20 = vld [vmem:[%s954_s1 + $0x68] sm:$0xff] (!%p239_p2)  ;;  %v295_v22 = vld [vmem:[%s954_s1 + $0x70] sm:$0xff] (!%p239_p2)  ;;  %vm381_vm0 = vcmp.lt.s32.totalorder (!%p239_p2), %v380_v32, 32 }
   0xa   : > { %706 = vmatprep.subr.bf16.mxu0 (!%p239_p2), %v705_v5  ;;  %v725_v21 = vpack.c.bf16 (!%p239_p2), %v294_v20, %v293_v19  ;;  %v296_v23 = vld [vmem:[%s954_s1 + $0x78] sm:$0xff] (!%p239_p2)  ;;  %v589_v26 = vld [vmem:[%s955_s2] ss:$0 sm:$0xff] (!%p239_p2)  ;;  %v590_v36 = vsel (!%p239_p2), %vm381_vm0, 1.0, %v780_v35  ;;  %v435_v46 = vld [vmem:[%s958_s5 + $0x8] sm:$0xff] (!%p239_p2) }
   0xb   : > { %v729_v24 = vpack.c.bf16 (!%p239_p2), %v296_v23, %v295_v22  ;;  %v434_v45 = vld [vmem:[%s958_s5] sm:$0xff] (!%p239_p2)  ;;  %v436_v49 = vld [vmem:[%s958_s5 + $0x10] sm:$0xff] (!%p239_p2)  ;;  %v437_v50 = vld [vmem:[%s958_s5 + $0x18] sm:$0xff] (!%p239_p2) }
   0xc   : > { %v734_v47 = vpack.c.bf16 (!%p239_p2), %v435_v46, %v434_v45  ;;  %v737_v51 = vpack.c.bf16 (!%p239_p2), %v437_v50, %v436_v49  ;;  %v438_v52 = vld [vmem:[%s958_s5 + $0x20] sm:$0xff] (!%p239_p2)  ;;  %v439_v53 = vld [vmem:[%s958_s5 + $0x28] sm:$0xff] (!%p239_p2)  ;;  %v440_v55 = vld [vmem:[%s958_s5 + $0x30] sm:$0xff] (!%p239_p2) }
   0xd   : > { %s962_s9 = smov (!%p270_p3, %s586_s9), 3  ;;  %708 = vmatpush3.bf16.msra.mxu0 %v705_v5  ;;  %v740_v54 = vpack.c.bf16 %v439_v53, %v438_v52  ;;  %v441_v56 = vld [vmem:[%s958_s5 + $0x38] sm:$0xff]  ;;  %v442_v58 = vld [vmem:[%s958_s5 + $0x40] sm:$0xff]  ;;  %v443_v59 = vld [vmem:[%s958_s5 + $0x48] sm:$0xff]  ;;  %s964_s25 = smov (!%p275_p4, %s829_s25), 1 }
   0xe   : > { %s587_s16 = sshll.u32 %s962_s9, 3  ;;  %710 = vmatprep.subr.bf16.mxu0 %v709_v8  ;;  %735 = vmatpush3.bf16.msra.mxu1 %v734_v47  ;;  %v743_v57 = vpack.c.bf16 %v441_v56, %v440_v55  ;;  %v746_v60 = vpack.c.bf16 %v443_v59, %v442_v58  ;;  %v444_v61 = vld [vmem:[%s958_s5 + $0x50] sm:$0xff]  ;;  %v445_v62 = vld [vmem:[%s958_s5 + $0x58] sm:$0xff]  ;;  %v446_v0 = vld [vmem:[%s958_s5 + $0x60] sm:$0xff]  ;;  %s588_s15 = sshll.u32 %s964_s25, 3 }
   0xf   : > { %s273_s23 = scalar_lea.vmem %s953_s0, %s587_s16  ;;  %736 = vmatprep.subr.bf16.mxu1 %v781_v48  ;;  %v749_v63 = vpack.c.bf16 %v445_v62, %v444_v61  ;;  %v447_v1 = vld [vmem:[%s958_s5 + $0x68] sm:$0xff]  ;;  %v448_v3 = vld [vmem:[%s958_s5 + $0x70] sm:$0xff]  ;;  %v449_v4 = vld [vmem:[%s958_s5 + $0x78] sm:$0xff]  ;;  %s278_s20 = scalar_lea.vmem %s960_s7, %s588_s15 }
  0x10   : > { %v279_v11 = vld [vmem:[%s273_s23] sm:$0xff]  ;;  %v280_v25 = vld [vmem:[%s273_s23 + $0x8] sm:$0xff]  ;;  %v752_v2 = vpack.c.bf16 %v447_v1, %v446_v0  ;;  %v755_v5 = vpack.c.bf16 %v449_v4, %v448_v3 }
  0x11   : > { %663 = vmatprep.mubr.f32.mxu0 %v279_v11  ;;  %712 = vmatpush3.bf16.msra.mxu0 %v709_v8  ;;  %v591_v14 = vld [vmem:[%s956_s3] ss:$0 sm:$0xff] }
  0x12   : > { %714 = vmatprep.subr.bf16.mxu0 %v713_v12  ;;  %738 = vmatpush3.bf16.msra.mxu1 %v737_v51 }
  0x13   : > { %739 = vmatprep.subr.bf16.mxu1 %v781_v48 }
  0x15   : > { %716 = vmatpush3.bf16.msra.mxu0 %v713_v12 }
  0x16   : > { %718 = vmatprep.subr.bf16.mxu0 %v717_v15  ;;  %741 = vmatpush3.bf16.msra.mxu1 %v740_v54 }
  0x17   : > { %742 = vmatprep.subr.bf16.mxu1 %v781_v48 }
  0x19   : > { %720 = vmatpush3.bf16.msra.mxu0 %v717_v15 }
  0x1a   : > { %722 = vmatprep.subr.bf16.mxu0 %v721_v18  ;;  %744 = vmatpush3.bf16.msra.mxu1 %v743_v57 }
  0x1b   : > { %745 = vmatprep.subr.bf16.mxu1 %v781_v48 }
  0x1d   : > { %724 = vmatpush3.bf16.msra.mxu0 %v721_v18  ;;  %v592_v18 = vld [vmem:[%s957_s4] ss:$0 sm:$0xff] }
  0x1e   : > { %726 = vmatprep.subr.bf16.mxu0 %v725_v21  ;;  %747 = vmatpush3.bf16.msra.mxu1 %v746_v60 }
  0x1f   : > { %748 = vmatprep.subr.bf16.mxu1 %v781_v48 }
  0x21   : > { %728 = vmatpush3.bf16.msra.mxu0 %v725_v21 }
  0x22   : > { %730 = vmatprep.subr.bf16.mxu0 %v729_v24  ;;  %750 = vmatpush3.bf16.msra.mxu1 %v749_v63 }
  0x23   : > { %751 = vmatprep.subr.bf16.mxu1 %v781_v48 }
  0x25   : > { %732 = vmatpush3.bf16.msra.mxu0 %v729_v24 }
  0x26   : > { %753 = vmatpush3.bf16.msra.mxu1 %v752_v2 }
  0x27   : > { %754 = vmatprep.subr.bf16.mxu1 %v781_v48 }
  0x28   : > { %664 = vmatmul.mubr.f32.vlgmr.msra.gmra.mrb[0].mxu0 %v280_v25 }
  0x2a   : > { %756 = vmatpush3.bf16.msra.mxu1 %v755_v5 }
  0xfb   : > { %v665_v27 = vpop.f32.mrb[0].mxu0 }
  0xfc   : > { %v370_v28 = vpop.f32.mrb[1].mxu0  ;;  %v376_v30 = vadd.f32 %v665_v27, %v589_v26 }
  0xfd   : > { %v371_v29 = vadd.f32 %v589_v26, %v370_v28 }
  0xff   : > { %384 = vadd.xlane.f32.xlu0 %v371_v29 }
 0x103   : > { %386 = vadd.xlane.f32.xlu0 %v376_v30 }
 0x18c   : > { %v385_v33 = vpop.xlane.xlu0 %384 }
 0x18d   : > { %v388_v34 = vmul.f32 0.03125, %v385_v33 }
 0x18f   : > { %v390_v37 = vsub.f32 %v371_v29, %v388_v34 }
 0x190   : > { %v387_v38 = vpop.xlane.xlu0 %386 }
 0x191   : > { %v389_v39 = vmul.f32 0.03125, %v387_v38  ;;  %v392_v40 = vmul.f32 %v590_v36, %v390_v37 }
 0x193   : > { %v391_v41 = vsub.f32 %v376_v30, %v389_v39  ;;  %v394_v42 = vmul.f32 %v392_v40, %v392_v40  ;;  %v593_v30 = vld [vmem:[%s959_s6] ss:$0 sm:$0xff] }
 0x195   : > { %396 = vadd.xlane.f32.xlu1 %v394_v42  ;;  %v393_v43 = vmul.f32 %v590_v36, %v391_v41 }
 0x197   : > { %v395_v44 = vmul.f32 %v393_v43, %v393_v43 }
 0x199   : > { %398 = vadd.xlane.f32.xlu1 %v395_v44 }
 0x222   : > { %v397_v6 = vpop.xlane.xlu1 %396 }
 0x223   : > { %v400_v7 = vmul.f32 0.03125, %v397_v6 }
 0x225   : > { %v402_v8 = vadd.f32 1e-05, %v400_v7 }
 0x226   : > { %v399_v9 = vpop.xlane.xlu1 %398 }
 0x227   : > { %768 = vrsqrt.f32 %v402_v8  ;;  %v401_v10 = vmul.f32 0.03125, %v399_v9 }
 0x229   : > { %v403_v11 = vadd.f32 1e-05, %v401_v10 }
 0x22b   : > { %770 = vrsqrt.f32 %v403_v11 }
 0x231   : > { %v769_v12 = vpop.eup %768 }
 0x232   : > { %v406_v13 = vmul.f32 %v769_v12, %v392_v40 }
 0x234   : > { %v415_v17 = vmul.f32 %v591_v14, %v406_v13 }
 0x235   : > { %v771_v15 = vpop.eup %770 }
 0x236   : > { %v407_v16 = vmul.f32 %v771_v15, %v393_v43  ;;  %v424_v20 = vadd.f32 %v592_v18, %v415_v17 }
 0x238   : > { %v416_v19 = vmul.f32 %v591_v14, %v407_v16 }
 0x23a   : > { %v425_v21 = vadd.f32 %v592_v18, %v416_v19 }
 0x23c   : > { %v426_v22 = vadd.f32 %v425_v21, %v424_v20 }
 0x23e   : > { %v427_v23 = vrot.slane %v426_v22, 4 }
 0x240   : > { %v428_v24 = vadd.f32 %v427_v23, %v426_v22 }
 0x242   : > { %v429_v25 = vrot.slane %v428_v24, 2 }
 0x244   : > { %v430_v26 = vadd.f32 %v429_v25, %v428_v24 }
 0x246   : > { %v431_v27 = vrot.slane %v430_v26, 1 }
 0x248   : > { %v432_v28 = vadd.f32 %v431_v27, %v430_v26 }
 0x24a   : > { %v433_v29 = vmul.f32 0.0625, %v432_v28 }
 0x24c   : > { %699 = vmatmul.mubr.f32.vlgmr.msra.gmra.mrb[0].mxu1 %v433_v29 }
 0x31f   : > { %v523_v31 = vpop.f32.mrb[0].mxu1 }
 0x320   : > { %v524_v32 = vadd.f32 %v593_v30, %v523_v31  ;;  %v700_v33 = vpop.f32.mrb[1].mxu1 }
 0x322   : > { %527 = vst [vmem:[%s278_s20] sm:$0xff] %v524_v32 }
 0x323 PF: > { %s17_s24 = sadd.s32 1, %s778_s24  }
 0x324   : > { %p14_p5 = scmp.ge.s32.totalorder %s17_s24, 4  }
 0x326   :  { %16 = sbr.rel (!%p14_p5) target bundleno = 1 (0x1), region = 78 }

</bundles_post_ra>
